<compile_context>
chip_gen: v7x
topology: tpu7x:2x2x1
jax: 0.10.0
libtpu: 0.0.40
codegen_flags: <defaults>
</compile_context>

<pallas_src>
import functools

import jax
import jax.numpy as jnp
from jax import lax
from jax.experimental import pallas as pl
from jax.experimental.pallas import tpu as pltpu


NEG_SLOPE = 0.01  # nn.LeakyReLU() default


def _residual_block_kernel(x_ref, w1_ref, b1_ref, w2_ref, b2_ref, o_ref, *, C):
    # x_ref : (1, H, W*C)        lane-dense activations (native dtype)
    # w1_ref: (3, W*C,  W1*C)    banded conv1 weights (one slab per kh)
    # b1_ref: (1, W1*C)          conv1 bias tiled over W1 (f32)
    # w2_ref: (3, W1*C, W2*C)    banded conv2 weights
    # b2_ref: (1, W2*C)          conv2 bias tiled over W2 (f32)
    # o_ref : (1, H2, W2*C)
    x = x_ref[0]                                   # (H, W*C), native dtype
    H = x.shape[0]
    H1, H2 = H - 2, H - 4
    W2C = w2_ref.shape[2]

    # ---- conv1: three full-width MXU matmuls (one per kernel row kh). ----
    # kw shifts + c_in contraction live inside the banded weight slabs, so the
    # only in-kernel slices are sublane-contiguous H slices.
    acc1 = (jnp.dot(x[0:H1, :], w1_ref[0], preferred_element_type=jnp.float32)
            + jnp.dot(x[1:1 + H1, :], w1_ref[1], preferred_element_type=jnp.float32)
            + jnp.dot(x[2:2 + H1, :], w1_ref[2], preferred_element_type=jnp.float32)
            + b1_ref[...])                         # bias added once, at the end

    # ---- LeakyReLU (VPU) ----
    act = jnp.where(acc1 >= 0, acc1, NEG_SLOPE * acc1).astype(x.dtype)

    # ---- conv2: same scheme ----
    acc2 = (jnp.dot(act[0:H2, :], w2_ref[0], preferred_element_type=jnp.float32)
            + jnp.dot(act[1:1 + H2, :], w2_ref[1], preferred_element_type=jnp.float32)
            + jnp.dot(act[2:2 + H2, :], w2_ref[2], preferred_element_type=jnp.float32)
            + b2_ref[...])

    # ---- residual add of the center-cropped input ----
    res = acc2 + x[2:2 + H2, 2 * C:2 * C + W2C].astype(jnp.float32)
    o_ref[0] = res.astype(o_ref.dtype)


def _banded_conv_weights(w, w_in, dtype):
    """(3,3,C_in,C_out) conv weights -> (3, w_in*C, (w_in-2)*C) banded slabs.

    slab[kh][(wo+kw)*C + ci, wo*C + co] = w[kh, kw, ci, co]  (zeros elsewhere),
    so   y[h, wo*C + co] = sum_kh  x[h+kh, :] @ slab[kh]
    realizes the 3x3 "valid" conv with kw & c_in contracted inside one matmul.
    """
    C = w.shape[2]
    w_out = w_in - 2
    rows = jnp.arange(w_in)
    cols = jnp.arange(w_out)
    slabs = []
    for kh in range(3):
        m = jnp.zeros((w_in * C, w_out * C), dtype=jnp.float32)
        for kw in range(3):
            sel = (rows[:, None] == (cols[None, :] + kw)).astype(jnp.float32)
            m = m + jnp.kron(sel, w[kh, kw].astype(jnp.float32))
        slabs.append(m)
    return jnp.stack(slabs, axis=0).astype(dtype)


def residual_block(x_nchw, w1, b1, w2, b2):
    """x_nchw: (B, C, H, W); w*: (3, 3, C, C); b*: (C,). Returns (B, C, H-4, W-4)."""
    B, C, H, W = x_nchw.shape
    W1, W2 = W - 2, W - 4
    H2 = H - 4
    dt = x_nchw.dtype

    # NCHW -> (B, H, W*C): channels fused with width on the lane axis.
    # TODO(synk): in a full network keep activations in this lane-dense layout
    # end-to-end so this transpose does not cost an extra HBM round trip.
    x_lane = jnp.transpose(x_nchw, (0, 2, 3, 1)).reshape(B, H, W * C)

    w1_band = _banded_conv_weights(w1, W, dt)         # (3, W*C,  W1*C)
    w2_band = _banded_conv_weights(w2, W1, dt)        # (3, W1*C, W2*C)
    b1_row = jnp.tile(b1.astype(jnp.float32), W1).reshape(1, W1 * C)
    b2_row = jnp.tile(b2.astype(jnp.float32), W2).reshape(1, W2 * C)

    kernel = functools.partial(_residual_block_kernel, C=C)

    # TODO(synk): for large H, tile the H axis with a 4-row halo (manual DMA)
    # instead of whole-image blocks so VMEM stays bounded on v7x (64 MiB) and
    # the H-tile axis becomes a second "parallel" grid dimension.
    out_lane = pl.pallas_call(
        kernel,
        out_shape=jax.ShapeDtypeStruct((B, H2, W2 * C), dt),
        grid_spec=pltpu.PrefetchScalarGridSpec(
            num_scalar_prefetch=0,
            grid=(B,),
            in_specs=[
                pl.BlockSpec((1, H, W * C), lambda b: (b, 0, 0)),
                pl.BlockSpec((3, W * C, W1 * C), lambda b: (0, 0, 0)),
                pl.BlockSpec((1, W1 * C), lambda b: (0, 0)),
                pl.BlockSpec((3, W1 * C, W2 * C), lambda b: (0, 0, 0)),
                pl.BlockSpec((1, W2 * C), lambda b: (0, 0)),
            ],
            out_specs=pl.BlockSpec((1, H2, W2 * C), lambda b: (b, 0, 0)),
        ),
        compiler_params=pltpu.CompilerParams(
            dimension_semantics=("parallel",),
            vmem_limit_bytes=48 * 1024 * 1024),
    )(x_lane, w1_band, b1_row, w2_band, b2_row)

    # Back to NCHW for the PyTorch-facing interface.
    return jnp.transpose(out_lane.reshape(B, H2, W2, C), (0, 3, 1, 2))


def _reference(x_nchw, w1, b1, w2, b2):
    """Pure-JAX reference (lax.conv) mirroring the PyTorch forward."""
    def to_oihw(w):
        return jnp.transpose(w, (3, 2, 0, 1))
    dn = lax.conv_dimension_numbers(x_nchw.shape, to_oihw(w1).shape,
                                    ("NCHW", "OIHW", "NCHW"))
    y = lax.conv_general_dilated(x_nchw, to_oihw(w1), (1, 1), "VALID",
                                 dimension_numbers=dn)
    y = y + b1.reshape(1, -1, 1, 1)
    y = jnp.where(y >= 0, y, NEG_SLOPE * y)
    y = lax.conv_general_dilated(y, to_oihw(w2), (1, 1), "VALID",
                                 dimension_numbers=dn)
    y = y + b2.reshape(1, -1, 1, 1)
    return y + x_nchw[:, :, 2:-2, 2:-2]


if __name__ == "__main__":
    B, C, H, W = 2, 4, 16, 16
    key = jax.random.PRNGKey(0)
    kx, k1, kb1, k2, kb2 = jax.random.split(key, 5)

    x = jax.random.normal(kx, (B, C, H, W), dtype=jnp.float32)
    # Deterministic synthetic parameters (shapes from nn.Conv2d(C, C, 3, bias=True)).
    fan_in = C * 3 * 3
    scale = 1.0 / jnp.sqrt(fan_in)
    w1 = jax.random.uniform(k1, (3, 3, C, C), jnp.float32, -scale, scale)
    b1 = jax.random.uniform(kb1, (C,), jnp.float32, -scale, scale)
    w2 = jax.random.uniform(k2, (3, 3, C, C), jnp.float32, -scale, scale)
    b2 = jax.random.uniform(kb2, (C,), jnp.float32, -scale, scale)

    out = residual_block(x, w1, b1, w2, b2)
    out = jax.block_until_ready(out)

    ref = _reference(x, w1, b1, w2, b2)
    assert out.shape == (B, C, H - 4, W - 4), out.shape
    assert jnp.allclose(out, ref, atol=1e-4, rtol=1e-4), "mismatch vs reference"

    print("KERNEL_OK")
</pallas_src>

<mosaic_0001>
module attributes {stable_mosaic.version = 11 : i64} {
  func.func @_residual_block_kernel(%arg0: i32, %arg1: memref<1x16x64xf32, #tpu.memory_space<vmem>>, %arg2: memref<3x64x56xf32, #tpu.memory_space<vmem>>, %arg3: memref<1x56xf32, #tpu.memory_space<vmem>>, %arg4: memref<3x56x48xf32, #tpu.memory_space<vmem>>, %arg5: memref<1x48xf32, #tpu.memory_space<vmem>>, %arg6: memref<1x12x48xf32, #tpu.memory_space<vmem>>) attributes {dimension_semantics = [#tpu.dimension_semantics<parallel>], iteration_bounds = array<i64: 2>, scalar_prefetch = 0 : i64, scratch_operands = 0 : i64, tpu.core_type = #tpu.core_type<tc>, window_params = [{transform_indices = @transform_0, window_bounds = array<i64: 1, 16, 64>}, {pipeline_mode = #tpu.pipeline_mode<synchronous>, transform_indices = @transform_1, window_bounds = array<i64: 3, 64, 56>}, {pipeline_mode = #tpu.pipeline_mode<synchronous>, transform_indices = @transform_2, window_bounds = array<i64: 1, 56>}, {pipeline_mode = #tpu.pipeline_mode<synchronous>, transform_indices = @transform_3, window_bounds = array<i64: 3, 56, 48>}, {pipeline_mode = #tpu.pipeline_mode<synchronous>, transform_indices = @transform_4, window_bounds = array<i64: 1, 48>}, {transform_indices = @transform_5, window_bounds = array<i64: 1, 12, 48>}]} {
    %c0 = arith.constant 0 : index
    %c0_0 = arith.constant 0 : index
    %c0_1 = arith.constant 0 : index
    %0 = vector.load %arg1[%c0, %c0_0, %c0_1] : memref<1x16x64xf32, #tpu.memory_space<vmem>>, vector<1x16x64xf32>
    %1 = vector.shape_cast %0 : vector<1x16x64xf32> to vector<16x64xf32>
    %2 = vector.extract_strided_slice %1 {offsets = [0, 0], sizes = [14, 64], strides = [1, 1]} : vector<16x64xf32> to vector<14x64xf32>
    %c0_2 = arith.constant 0 : index
    %c0_3 = arith.constant 0 : index
    %c0_4 = arith.constant 0 : index
    %3 = vector.load %arg2[%c0_2, %c0_3, %c0_4] : memref<3x64x56xf32, #tpu.memory_space<vmem>>, vector<1x64x56xf32>
    %4 = vector.shape_cast %3 : vector<1x64x56xf32> to vector<64x56xf32>
    %cst = arith.constant dense<0.000000e+00> : vector<14x56xf32>
    %5 = tpu.matmul %2, %4, %cst {dimension_numbers = #tpu.dot_dimension_numbers<[1], [0], [0], [1], [0, 0, 1, 1], [], []>} : vector<14x64xf32>, vector<64x56xf32>, vector<14x56xf32> -> vector<14x56xf32>
    %6 = vector.extract_strided_slice %1 {offsets = [1, 0], sizes = [14, 64], strides = [1, 1]} : vector<16x64xf32> to vector<14x64xf32>
    %c1 = arith.constant 1 : index
    %c0_5 = arith.constant 0 : index
    %c0_6 = arith.constant 0 : index
    %7 = vector.load %arg2[%c1, %c0_5, %c0_6] : memref<3x64x56xf32, #tpu.memory_space<vmem>>, vector<1x64x56xf32>
    %8 = vector.shape_cast %7 : vector<1x64x56xf32> to vector<64x56xf32>
    %cst_7 = arith.constant dense<0.000000e+00> : vector<14x56xf32>
    %9 = tpu.matmul %6, %8, %cst_7 {dimension_numbers = #tpu.dot_dimension_numbers<[1], [0], [0], [1], [0, 0, 1, 1], [], []>} : vector<14x64xf32>, vector<64x56xf32>, vector<14x56xf32> -> vector<14x56xf32>
    %10 = arith.addf %5, %9 : vector<14x56xf32>
    %11 = vector.extract_strided_slice %1 {offsets = [2, 0], sizes = [14, 64], strides = [1, 1]} : vector<16x64xf32> to vector<14x64xf32>
    %c2 = arith.constant 2 : index
    %c0_8 = arith.constant 0 : index
    %c0_9 = arith.constant 0 : index
    %12 = vector.load %arg2[%c2, %c0_8, %c0_9] : memref<3x64x56xf32, #tpu.memory_space<vmem>>, vector<1x64x56xf32>
    %13 = vector.shape_cast %12 : vector<1x64x56xf32> to vector<64x56xf32>
    %cst_10 = arith.constant dense<0.000000e+00> : vector<14x56xf32>
    %14 = tpu.matmul %11, %13, %cst_10 {dimension_numbers = #tpu.dot_dimension_numbers<[1], [0], [0], [1], [0, 0, 1, 1], [], []>} : vector<14x64xf32>, vector<64x56xf32>, vector<14x56xf32> -> vector<14x56xf32>
    %15 = arith.addf %10, %14 : vector<14x56xf32>
    %c0_11 = arith.constant 0 : index
    %c0_12 = arith.constant 0 : index
    %16 = vector.load %arg3[%c0_11, %c0_12] : memref<1x56xf32, #tpu.memory_space<vmem>>, vector<1x56xf32>
    %17 = vector.broadcast %16 : vector<1x56xf32> to vector<14x56xf32>
    %18 = arith.addf %15, %17 : vector<14x56xf32>
    %cst_13 = arith.constant 0.000000e+00 : f32
    %19 = vector.broadcast %cst_13 : f32 to vector<14x56xf32>
    %20 = arith.cmpf oge, %18, %19 : vector<14x56xf32>
    %cst_14 = arith.constant 0.00999999977 : f32
    %21 = vector.broadcast %cst_14 : f32 to vector<14x56xf32>
    %22 = arith.mulf %21, %18 : vector<14x56xf32>
    %23 = arith.select %20, %18, %22 : vector<14x56xi1>, vector<14x56xf32>
    %24 = vector.extract_strided_slice %23 {offsets = [0, 0], sizes = [12, 56], strides = [1, 1]} : vector<14x56xf32> to vector<12x56xf32>
    %c0_15 = arith.constant 0 : index
    %c0_16 = arith.constant 0 : index
    %c0_17 = arith.constant 0 : index
    %25 = vector.load %arg4[%c0_15, %c0_16, %c0_17] : memref<3x56x48xf32, #tpu.memory_space<vmem>>, vector<1x56x48xf32>
    %26 = vector.shape_cast %25 : vector<1x56x48xf32> to vector<56x48xf32>
    %cst_18 = arith.constant dense<0.000000e+00> : vector<12x48xf32>
    %27 = tpu.matmul %24, %26, %cst_18 {dimension_numbers = #tpu.dot_dimension_numbers<[1], [0], [0], [1], [0, 0, 1, 1], [], []>} : vector<12x56xf32>, vector<56x48xf32>, vector<12x48xf32> -> vector<12x48xf32>
    %28 = vector.extract_strided_slice %23 {offsets = [1, 0], sizes = [12, 56], strides = [1, 1]} : vector<14x56xf32> to vector<12x56xf32>
    %c1_19 = arith.constant 1 : index
    %c0_20 = arith.constant 0 : index
    %c0_21 = arith.constant 0 : index
    %29 = vector.load %arg4[%c1_19, %c0_20, %c0_21] : memref<3x56x48xf32, #tpu.memory_space<vmem>>, vector<1x56x48xf32>
    %30 = vector.shape_cast %29 : vector<1x56x48xf32> to vector<56x48xf32>
    %cst_22 = arith.constant dense<0.000000e+00> : vector<12x48xf32>
    %31 = tpu.matmul %28, %30, %cst_22 {dimension_numbers = #tpu.dot_dimension_numbers<[1], [0], [0], [1], [0, 0, 1, 1], [], []>} : vector<12x56xf32>, vector<56x48xf32>, vector<12x48xf32> -> vector<12x48xf32>
    %32 = arith.addf %27, %31 : vector<12x48xf32>
    %33 = vector.extract_strided_slice %23 {offsets = [2, 0], sizes = [12, 56], strides = [1, 1]} : vector<14x56xf32> to vector<12x56xf32>
    %c2_23 = arith.constant 2 : index
    %c0_24 = arith.constant 0 : index
    %c0_25 = arith.constant 0 : index
    %34 = vector.load %arg4[%c2_23, %c0_24, %c0_25] : memref<3x56x48xf32, #tpu.memory_space<vmem>>, vector<1x56x48xf32>
    %35 = vector.shape_cast %34 : vector<1x56x48xf32> to vector<56x48xf32>
    %cst_26 = arith.constant dense<0.000000e+00> : vector<12x48xf32>
    %36 = tpu.matmul %33, %35, %cst_26 {dimension_numbers = #tpu.dot_dimension_numbers<[1], [0], [0], [1], [0, 0, 1, 1], [], []>} : vector<12x56xf32>, vector<56x48xf32>, vector<12x48xf32> -> vector<12x48xf32>
    %37 = arith.addf %32, %36 : vector<12x48xf32>
    %c0_27 = arith.constant 0 : index
    %c0_28 = arith.constant 0 : index
    %38 = vector.load %arg5[%c0_27, %c0_28] : memref<1x48xf32, #tpu.memory_space<vmem>>, vector<1x48xf32>
    %39 = vector.broadcast %38 : vector<1x48xf32> to vector<12x48xf32>
    %40 = arith.addf %37, %39 : vector<12x48xf32>
    %41 = vector.extract_strided_slice %1 {offsets = [2, 8], sizes = [12, 48], strides = [1, 1]} : vector<16x64xf32> to vector<12x48xf32>
    %42 = arith.addf %40, %41 : vector<12x48xf32>
    %c0_29 = arith.constant 0 : index
    %c0_30 = arith.constant 0 : index
    %c0_31 = arith.constant 0 : index
    %43 = vector.load %arg6[%c0_29, %c0_30, %c0_31] : memref<1x12x48xf32, #tpu.memory_space<vmem>>, vector<1x12x48xf32>
    %44 = vector.shape_cast %43 : vector<1x12x48xf32> to vector<12x48xf32>
    %45 = vector.shape_cast %42 : vector<12x48xf32> to vector<1x12x48xf32>
    tpu.vector_store %arg6[%c0_29, %c0_30, %c0_31], %45 {strides = array<i32>} : memref<1x12x48xf32, #tpu.memory_space<vmem>>, vector<1x12x48xf32>,
    return
  }
  func.func @transform_0(%arg0: i32) -> (i32, i32, i32) {
    %c0_i32 = arith.constant 0 : i32
    %c0_i32_0 = arith.constant 0 : i32
    %c0_i32_1 = arith.constant 0 : i32
    return %arg0, %c0_i32, %c0_i32_0 : i32, i32, i32
  }
  func.func @transform_1(%arg0: i32) -> (i32, i32, i32) {
    %c0_i32 = arith.constant 0 : i32
    %c0_i32_0 = arith.constant 0 : i32
    %c0_i32_1 = arith.constant 0 : i32
    %c0_i32_2 = arith.constant 0 : i32
    return %c0_i32, %c0_i32_0, %c0_i32_1 : i32, i32, i32
  }
  func.func @transform_2(%arg0: i32) -> (i32, i32) {
    %c0_i32 = arith.constant 0 : i32
    %c0_i32_0 = arith.constant 0 : i32
    %c0_i32_1 = arith.constant 0 : i32
    return %c0_i32, %c0_i32_0 : i32, i32
  }
  func.func @transform_3(%arg0: i32) -> (i32, i32, i32) {
    %c0_i32 = arith.constant 0 : i32
    %c0_i32_0 = arith.constant 0 : i32
    %c0_i32_1 = arith.constant 0 : i32
    %c0_i32_2 = arith.constant 0 : i32
    return %c0_i32, %c0_i32_0, %c0_i32_1 : i32, i32, i32
  }
  func.func @transform_4(%arg0: i32) -> (i32, i32) {
    %c0_i32 = arith.constant 0 : i32
    %c0_i32_0 = arith.constant 0 : i32
    %c0_i32_1 = arith.constant 0 : i32
    return %c0_i32, %c0_i32_0 : i32, i32
  }
  func.func @transform_5(%arg0: i32) -> (i32, i32, i32) {
    %c0_i32 = arith.constant 0 : i32
    %c0_i32_0 = arith.constant 0 : i32
    %c0_i32_1 = arith.constant 0 : i32
    return %arg0, %c0_i32, %c0_i32_0 : i32, i32, i32
  }
}

</mosaic_0001>

<bundles_post_ra>
// kernel: tpu_custom_call.1
= control target key start
LH: loop header
LB: loop body
LE: loop exit
PB: predicated region body
PF: predicated region fallthrough
CT: control target
= control target key end

     0   :  { %s1227_s18 = smov 0   ;;  %s1408_s0 = inlined_call_operand.vmem [shape: f32[2,16,64], index: 0, kind: input, shape index: {}]   ;;  %s1409_s1 = inlined_call_operand.vmem [shape: f32[3,64,56], index: 1, kind: input, shape index: {}]   ;;  %s1410_s2 = inlined_call_operand.vmem [shape: f32[1,56], index: 2, kind: input, shape index: {}]   ;;  %s1411_s3 = inlined_call_operand.vmem [shape: f32[3,56,48], index: 3, kind: input, shape index: {}]   ;;  %s1412_s4 = inlined_call_operand.vmem [shape: f32[1,48], index: 4, kind: input, shape index: {}]   ;;  %s1413_s5 = inlined_call_operand.vmem [shape: f32[2,12,48], index: 5, kind: output, shape index: {}]  }
   0x1 LB: > { %s865_s19 = sadd.s32 4294967295, %s1194_s18   ;;  %p869_p0 = scmp.ge.s32.totalorder %s1194_s18, 1  ;;  %s1194_s18 = sphi %s1227_s18, %s15_s18  }
   0x2   : > { %p187_p1 = scmp.lt.s32.totalorder %s1194_s18, 3 }
   0x4   : > { %p188_p2 = pnand %p869_p0, %p187_p1 }
   0x5   : > { %v874_v0 = vld [vmem:[%s1409_s1 + $0x40] sm:$0xff] (!%p188_p2)  ;;  %v875_v1 = vld [vmem:[%s1409_s1 + $0x48] sm:$0xff] (!%p188_p2)  ;;  %v876_v2 = vld [vmem:[%s1409_s1 + $0x50] sm:$0xff] (!%p188_p2)  ;;  %p215_p3 = scmp.lt.s32.totalorder (!%p188_p2), %s865_s19, 1  ;;  %vm246_vm0 = vcmask (!%p188_p2), 1046528   ;;  %vm250_vm1 = vcmask (!%p188_p2), 523264  }
   0x6   : > { %191 = sbr.rel (%p188_p2) target bundleno = 524 (0x20c), region = 40  ;;  %v1087_v3 = vpack.c.bf16 (!%p188_p2), %v875_v1, %v874_v0  ;;  %v877_v4 = vld [vmem:[%s1409_s1 + $0x58] sm:$0xff] (!%p188_p2)  ;;  %v878_v6 = vld [vmem:[%s1409_s1 + $0x60] sm:$0xff] (!%p188_p2)  ;;  %v879_v7 = vld [vmem:[%s1409_s1 + $0x68] sm:$0xff] (!%p188_p2)  ;;  %vm418_vm2 = vcmask (!%p188_p2), 1045504   ;;  %s1196_s23 = smov (!%p188_p2), 120  }
   0x7   : > { %v1091_v5 = vpack.c.bf16 (!%p188_p2), %v877_v4, %v876_v2  ;;  %v1095_v8 = vpack.c.bf16 (!%p188_p2), %v879_v7, %v878_v6  ;;  %v880_v9 = vld [vmem:[%s1409_s1 + $0x70] sm:$0xff] (!%p188_p2)  ;;  %v881_v10 = vld [vmem:[%s1409_s1 + $0x78] sm:$0xff] (!%p188_p2)  ;;  %v898_v18 = vld [vmem:[%s1411_s3 + $0x40] sm:$0xff] (!%p188_p2)  ;;  %vm538_vm5 = vcmask (!%p188_p2), 457728   ;;  %vm808_vm6 = vcmask (!%p188_p2), 388096  }
   0x8   : > { %1088 = vmatprep.subr.bf16.mxu0 (!%p188_p2), %v1087_v3  ;;  %v897_v15 = vld [vmem:[%s1411_s3 + $0x38] sm:$0xff] (!%p188_p2)  ;;  %v1099_v16 = vpack.c.bf16 (!%p188_p2), %v881_v10, %v880_v9  ;;  %v227_v19 = vld [vmem:[%s1409_s1] sm:$0xff] (!%p188_p2)  ;;  %v228_v20 = vld [vmem:[%s1409_s1 + $0x8] sm:$0xff] (!%p188_p2)  ;;  %vm806_vm7 = vcmask (!%p188_p2), 392192  }
   0x9   : > { %1090 = vmatpush3.bf16.msra.mxu0 (!%p188_p2), %v1087_v3  ;;  %v1135_v21 = vpack.c.bf16 (!%p188_p2), %v898_v18, %v897_v15  ;;  %v1103_v22 = vpack.c.bf16 (!%p188_p2), %v228_v20, %v227_v19  ;;  %v229_v23 = vld [vmem:[%s1409_s1 + $0x10] sm:$0xff] (!%p188_p2)  ;;  %v230_v24 = vld [vmem:[%s1409_s1 + $0x18] sm:$0xff] (!%p188_p2)  ;;  %v231_v26 = vld [vmem:[%s1409_s1 + $0x20] sm:$0xff] (!%p188_p2) }
   0xa   : > { %1092 = vmatprep.subr.bf16.mxu0 (!%p188_p2), %v1091_v5  ;;  %v1107_v25 = vpack.c.bf16 (!%p188_p2), %v230_v24, %v229_v23  ;;  %v232_v27 = vld [vmem:[%s1409_s1 + $0x28] sm:$0xff] (!%p188_p2)  ;;  %v233_v29 = vld [vmem:[%s1409_s1 + $0x30] sm:$0xff] (!%p188_p2)  ;;  %v234_v30 = vld [vmem:[%s1409_s1 + $0x38] sm:$0xff] (!%p188_p2) }
   0xb   : > { %1136 = vmatprep.subr.bf16.mxu1 (!%p188_p2), %v1135_v21  ;;  %v1111_v28 = vpack.c.bf16 (!%p188_p2), %v232_v27, %v231_v26  ;;  %v1115_v31 = vpack.c.bf16 (!%p188_p2), %v234_v30, %v233_v29  ;;  %v886_v32 = vld [vmem:[%s1409_s1 + $0x80] sm:$0xff] (!%p188_p2)  ;;  %v887_v33 = vld [vmem:[%s1409_s1 + $0x88] sm:$0xff] (!%p188_p2)  ;;  %v888_v37 = vld [vmem:[%s1409_s1 + $0x90] sm:$0xff] (!%p188_p2) }
   0xc   : > { %1138 = vmatpush3.bf16.msra.mxu1 (!%p188_p2), %v1135_v21  ;;  %v1119_v34 = vpack.c.bf16 (!%p188_p2), %v887_v33, %v886_v32  ;;  %v889_v38 = vld [vmem:[%s1409_s1 + $0x98] sm:$0xff] (!%p188_p2)  ;;  %v890_v41 = vld [vmem:[%s1409_s1 + $0xa0] sm:$0xff] (!%p188_p2)  ;;  %v891_v42 = vld [vmem:[%s1409_s1 + $0xa8] sm:$0xff] (!%p188_p2) }
   0xd   : > { %s1415_s19 = smov (!%p215_p3, %s865_s19), 1  ;;  %1094 = vmatpush3.bf16.msra.mxu0 %v1091_v5  ;;  %v1123_v39 = vpack.c.bf16 %v889_v38, %v888_v37  ;;  %v1127_v43 = vpack.c.bf16 %v891_v42, %v890_v41  ;;  %v892_v44 = vld [vmem:[%s1409_s1 + $0xb0] sm:$0xff]  ;;  %v893_v45 = vld [vmem:[%s1409_s1 + $0xb8] sm:$0xff]  ;;  %v899_v47 = vld [vmem:[%s1411_s3 + $0x48] sm:$0xff] }
   0xe   : > { %s920_s7 = sshll.u32 %s1415_s19, 4  ;;  %1096 = vmatprep.subr.bf16.mxu0 %v1095_v8  ;;  %v1131_v46 = vpack.c.bf16 %v893_v45, %v892_v44  ;;  %v900_v48 = vld [vmem:[%s1411_s3 + $0x50] sm:$0xff]  ;;  %v901_v50 = vld [vmem:[%s1411_s3 + $0x58] sm:$0xff]  ;;  %v902_v51 = vld [vmem:[%s1411_s3 + $0x60] sm:$0xff] }
   0xf   : > { %s219_s12 = scalar_lea.vmem %s1408_s0, %s920_s7  ;;  %v1139_v49 = vpack.c.bf16 %v900_v48, %v899_v47  ;;  %v1143_v52 = vpack.c.bf16 %v902_v51, %v901_v50  ;;  %v903_v53 = vld [vmem:[%s1411_s3 + $0x68] sm:$0xff]  ;;  %v518_v54 = vld [vmem:[%s1411_s3] sm:$0xff]  ;;  %v520_v4 = vld [vmem:[%s1411_s3 + $0x10] sm:$0xff]  ;;  %s224_s8 = scalar_lea.vmem %s1413_s5, %s920_s7 }
  0x10   : > { %v225_v11 = vld [vmem:[%s219_s12] sm:$0xff]  ;;  %v226_v12 = vld [vmem:[%s219_s12 + $0x8] sm:$0xff]  ;;  %v521_v5 = vld [vmem:[%s1411_s3 + $0x18] sm:$0xff] }
  0x11   : > { %v247_v13 = vrot.slane %v225_v11, 1  ;;  %v248_v14 = vrot.slane %v226_v12, 1  ;;  %1098 = vmatpush3.bf16.msra.mxu0 %v1095_v8  ;;  %v419_v35 = vrot.slane %v225_v11, 2  ;;  %v420_v36 = vrot.slane %v226_v12, 2  ;;  %1140 = vmatprep.subr.bf16.mxu1 %v1139_v49  ;;  %v519_v55 = vld [vmem:[%s1411_s3 + $0x8] sm:$0xff]  ;;  %v908_v15 = vld [vmem:[%s1411_s3 + $0x70] sm:$0xff] }
  0x12   : > { %1100 = vmatprep.subr.bf16.mxu0 %v1099_v16  ;;  %1142 = vmatpush3.bf16.msra.mxu1 %v1139_v49  ;;  %v1147_v56 = vpack.c.bf16 %v519_v55, %v518_v54  ;;  %v896_v57 = vld [vmem:[%s1410_s2] ss:$0 sm:$0xff]  ;;  %v1151_v9 = vpack.c.bf16 %v521_v5, %v520_v4  ;;  %v911_v18 = vld [vmem:[%s1411_s3 + $0x88] sm:$0xff]  ;;  %v912_v21 = vld [vmem:[%s1411_s3 + $0x90] sm:$0xff] }
  0x13   : > { %v249_v17 = vsel %vm246_vm0, %v247_v13, %v248_v14  ;;  %v421_v40 = vsel %vm418_vm2, %v419_v35, %v420_v36  ;;  %1144 = vmatprep.subr.bf16.mxu1 %v1143_v52  ;;  %v914_v24 = vld [vmem:[%s1411_s3 + $0xa0] sm:$0xff] }
  0x14   : > { %995 = vmatprep.mubr.msk.f32.mxu0 %vm250_vm1, %v249_v17  ;;  %798 = vrot.lane.b32.xlu0 %v421_v40, %s1196_s23  ;;  %v910_v17 = vld [vmem:[%s1411_s3 + $0x80] sm:$0xff] }
  0x15   : > { %1102 = vmatpush3.bf16.msra.mxu0 %v1099_v16  ;;  %v909_v16 = vld [vmem:[%s1411_s3 + $0x78] sm:$0xff]  ;;  %v1163_v20 = vpack.c.bf16 %v911_v18, %v910_v17  ;;  %v917_v26 = vld [vmem:[%s1412_s4] ss:$0 sm:$0xff] }
  0x16   : > { %1104 = vmatprep.subr.bf16.mxu0 %v1103_v22  ;;  %1146 = vmatpush3.bf16.msra.mxu1 %v1143_v52  ;;  %v1159_v19 = vpack.c.bf16 %v909_v16, %v908_v15 }
  0x17   : > { %1048 = vmatprep.subr.mxu1 %v903_v53 }
  0x18   : > { %996 = vmatmul.mubr.msk.f32.vlgmr.msra.gmra.mrb[0].mxu0 %vm250_vm1, %v248_v14  ;;  %800 = vrot.lane.b32.xlu0 %v420_v36, %s1196_s23  ;;  %v524_v14 = vld [vmem:[%s1411_s3 + $0x30] sm:$0xff] }
  0x19   : > { %1106 = vmatpush3.bf16.msra.mxu0 %v1103_v22  ;;  %1014 = vmatprep.mubr.msk.f32.mxu0 %vm250_vm1, %v225_v11  ;;  %v522_v11 = vld [vmem:[%s1411_s3 + $0x20] sm:$0xff]  ;;  %v913_v22 = vld [vmem:[%s1411_s3 + $0x98] sm:$0xff] }
  0x1a   : > { %1108 = vmatprep.subr.bf16.mxu0 %v1107_v25  ;;  %1049 = vmatpush3.msra.mxu1 %v903_v53  ;;  %v1167_v23 = vpack.c.bf16 %v913_v22, %v912_v21 }
  0x1b   : > { %1148 = vmatprep.subr.bf16.mxu1 %v1147_v56 }
  0x1d   : > { %1110 = vmatpush3.bf16.msra.mxu0 %v1107_v25 }
  0x1e   : > { %1112 = vmatprep.subr.bf16.mxu0 %v1111_v28 }
  0x21   : > { %1114 = vmatpush3.bf16.msra.mxu0 %v1111_v28 }
  0x22   : > { %1116 = vmatprep.subr.bf16.mxu0 %v1115_v31 }
  0x25   : > { %1118 = vmatpush3.bf16.msra.mxu0 %v1115_v31 }
  0x26   : > { %1120 = vmatprep.subr.bf16.mxu0 %v1119_v34 }
  0x28   : > { %1015 = vmatmul.mubr.msk.f32.vlgmr.msra.gmra.mrb[0].mxu0 %vm250_vm1, %v226_v12  ;;  %v523_v12 = vld [vmem:[%s1411_s3 + $0x28] sm:$0xff] }
  0x29   : > { %1122 = vmatpush3.bf16.msra.mxu0 %v1119_v34  ;;  %1033 = vmatprep.mubr.msk.f32.mxu0 %vm250_vm1, %v421_v40  ;;  %v1155_v13 = vpack.c.bf16 %v523_v12, %v522_v11 }
  0x2a   : > { %1124 = vmatprep.subr.bf16.mxu0 %v1123_v39 }
  0x2d   : > { %1126 = vmatpush3.bf16.msra.mxu0 %v1123_v39 }
  0x2e   : > { %1128 = vmatprep.subr.bf16.mxu0 %v1127_v43 }
  0x31   : > { %1130 = vmatpush3.bf16.msra.mxu0 %v1127_v43 }
  0x32   : > { %1132 = vmatprep.subr.bf16.mxu0 %v1131_v46 }
  0x35   : > { %1134 = vmatpush3.bf16.msra.mxu0 %v1131_v46 }
  0x38   : > { %1034 = vmatmul.mubr.msk.f32.vlgmr.msra.gmra.mrb[0].mxu0 %vm250_vm1, %v420_v36 }
  0x86   : > { %v799_v25 = vpop.permute.xlu0 %798 }
  0x8a   : > { %v801_v28 = vpop.permute.xlu0 %800 }
 0x10b   : > { %v1035_v58 = vpop.f32.mrb[0].mxu0 }
 0x10c   : > { %v511_v59 = vadd.f32 %v1035_v58, %v896_v57  ;;  %v492_v60 = vpop.f32.mrb[1].mxu0 }
 0x10d   : > { %v510_v61 = vadd.f32 %v896_v57, %v492_v60 }
 0x10e   : > { %vm513_vm3 = vcmp.ge.f32.partialorder %v511_v59, 0.0  ;;  %v515_v62 = vmul.f32 0.01, %v511_v59 }
 0x10f   : > { %vm512_vm4 = vcmp.ge.f32.partialorder %v510_v61, 0.0  ;;  %v514_v63 = vmul.f32 0.01, %v510_v61 }
 0x110   : > { %v517_v0 = vsel %vm513_vm3, %v511_v59, %v515_v62 }
 0x111   : > { %v706_v1 = vrot.slane %v517_v0, 2  ;;  %v516_v2 = vsel %vm512_vm4, %v510_v61, %v514_v63  ;;  %v536_v3 = vrot.slane %v517_v0, 1 }
 0x112   : > { %v705_v6 = vrot.slane %v516_v2, 2  ;;  %v535_v7 = vrot.slane %v516_v2, 1 }
 0x114   : > { %v537_v8 = vsel %vm246_vm0, %v535_v7, %v536_v3  ;;  %v707_v10 = vsel %vm418_vm2, %v705_v6, %v706_v1 }
 0x115   : > { %1050 = vmatprep.mubr.msk.f32.mxu1 %vm538_vm5, %v537_v8 }
 0x116   : > { %1051 = vmatmul.mubr.msk.f32.vlgmr.msra.gmra.mrb[0].mxu1 %vm538_vm5, %v536_v3 }
 0x117   : > { %1150 = vmatpush3.bf16.msra.mxu1 %v1147_v56  ;;  %1067 = vmatprep.mubr.msk.f32.mxu1 %vm538_vm5, %v516_v2 }
 0x118   : > { %1152 = vmatprep.subr.bf16.mxu1 %v1151_v9 }
 0x11b   : > { %1154 = vmatpush3.bf16.msra.mxu1 %v1151_v9 }
 0x11c   : > { %1156 = vmatprep.subr.bf16.mxu1 %v1155_v13 }
 0x11f   : > { %1158 = vmatpush3.bf16.msra.mxu1 %v1155_v13 }
 0x120   : > { %1065 = vmatprep.subr.mxu1 %v524_v14 }
 0x123   : > { %1066 = vmatpush3.msra.mxu1 %v524_v14 }
 0x124   : > { %1068 = vmatmul.mubr.msk.f32.vlgmr.msra.gmra.mrb[0].mxu1 %vm538_vm5, %v517_v0  ;;  %1160 = vmatprep.subr.bf16.mxu1 %v1159_v19 }
 0x125   : > { %1162 = vmatpush3.bf16.msra.mxu1 %v1159_v19  ;;  %1084 = vmatprep.mubr.msk.f32.mxu1 %vm538_vm5, %v707_v10 }
 0x126   : > { %1164 = vmatprep.subr.bf16.mxu1 %v1163_v20 }
 0x129   : > { %1166 = vmatpush3.bf16.msra.mxu1 %v1163_v20 }
 0x12a   : > { %1168 = vmatprep.subr.bf16.mxu1 %v1167_v23 }
 0x12d   : > { %1170 = vmatpush3.bf16.msra.mxu1 %v1167_v23 }
 0x12e   : > { %1082 = vmatprep.subr.mxu1 %v914_v24 }
 0x131   : > { %1083 = vmatpush3.msra.mxu1 %v914_v24 }
 0x132   : > { %1085 = vmatmul.mubr.msk.f32.vlgmr.msra.gmra.mrb[0].mxu1 %vm538_vm5, %v706_v1 }
 0x205   : > { %v1086_v27 = vpop.f32.mrb[0].mxu1 }
 0x206   : > { %v797_v29 = vadd.f32 %v1086_v27, %v917_v26  ;;  %v778_v30 = vpop.f32.mrb[1].mxu1 }
 0x207   : > { %v796_v31 = vadd.f32 %v917_v26, %v778_v30 }
 0x208   : > { %v805_v32 = vadd.f32 %v801_v28, %v797_v29 }
 0x209   : > { %v804_v33 = vadd.f32 %v799_v25, %v796_v31 }
 0x20a   : > { %809 = vst.msk [vmem:[%s224_s8 + $0x8] sm:$0xf] %vm808_vm6, %v805_v32 }
 0x20b   : > { %807 = vst.msk [vmem:[%s224_s8] sm:$0xff] %vm806_vm7, %v804_v33 }
 0x20c PF: > { %s15_s18 = sadd.s32 1, %s1194_s18  }
 0x20d   : > { %p12_p4 = scmp.ge.s32.totalorder %s15_s18, 4  }
 0x20f   :  { %14 = sbr.rel (!%p12_p4) target bundleno = 1 (0x1), region = 74 }

</bundles_post_ra>
